<compile_context>
chip_gen: v7x
topology: tpu7x:2x2x1
jax: 0.10.0
libtpu: 0.0.40
codegen_flags: <defaults>
</compile_context>

<pallas_src>
import functools

import jax
import jax.numpy as jnp
from jax.experimental import pallas as pl
from jax.experimental.pallas import tpu as pltpu


def _conv3x3_sigmoid_kernel(x_ref, w_ref, b_ref, o_ref, slab_ref, *,
                            wp, cin, lpad, n):
    # x_ref:    (Cin, Lin)      batch-folded, zero-padded, flattened input
    #                           (segment b = lanes [b*lpad, (b+1)*lpad), row stride wp)
    # w_ref:    (Cout, 72)      packed weights, column 8t+c = w[o, c, dy, dx], t = dy*3+dx
    # b_ref:    (Cout, 1)       bias
    # o_ref:    (N, Cout, lpad) lane-dense NCHW-ordered output
    # slab_ref: (72, L)         scratch slab, L = n*lpad
    L = n * lpad

    # Zero once so the 5 unused sublanes per tap can never inject NaN/Inf.
    slab_ref[...] = jnp.zeros_like(slab_ref)

    # Gather the 9 taps: tap (dy, dx) needs x[p + dy*wp + dx] at output column p.
    for t in range(9):
        dy, dx = divmod(t, 3)
        s = dy * wp + dx                       # static lane shift for this tap
        slab_ref[8 * t:8 * t + cin, :] = x_ref[:, s:s + L]

    # Single MXU matmul over the merged contraction (K = 72).
    acc = jnp.dot(w_ref[...], slab_ref[...],
                  preferred_element_type=jnp.float32)      # (Cout, L)
    acc = acc + b_ref[...]                                 # bias, broadcast over lanes
    res = jax.nn.sigmoid(acc).astype(o_ref.dtype)

    # Split lane-aligned batch segments back out -> NCHW order (no wrapper transpose).
    for b in range(n):
        o_ref[b, :, :] = res[:, b * lpad:(b + 1) * lpad]


@jax.jit
def conv3x3_sigmoid(x_nchw, w_oihw, bias):
    """x_nchw: (N, Cin, H, W); w_oihw: (Cout, Cin, 3, 3) (PyTorch OIHW); bias: (Cout,)."""
    n, cin, h, w = x_nchw.shape
    cout = w_oihw.shape[0]
    assert cin <= 8, "tap packing assumes Cin fits one sublane tile"
    hp, wp = h + 2, w + 2

    # Per-batch lane segment: must cover all flat output positions p = y*wp + x
    # (max (h-1)*wp + (w-1)) and the whole padded image (hp*wp); round to 128 lanes.
    lpad = pl.cdiv(max((h - 1) * wp + w, hp * wp), 128) * 128
    L = n * lpad                       # folded output width
    lin = (n + 1) * lpad               # one extra zero segment keeps tap slices in bounds

    # Input glue (tiny arrays): NCHW -> (Cin, N, Hp, Wp) -> flatten rows -> fold batch.
    xt = jnp.transpose(x_nchw, (1, 0, 2, 3))                       # (Cin, N, H, W)
    xp = jnp.pad(xt, ((0, 0), (0, 0), (1, 1), (1, 1)))             # (Cin, N, Hp, Wp)
    xf = xp.reshape(cin, n, hp * wp)
    xf = jnp.pad(xf, ((0, 0), (0, 1), (0, lpad - hp * wp)))        # (Cin, N+1, lpad)
    xf = xf.reshape(cin, lin)                                      # (Cin, Lin)

    # Weights: OIHW -> (Cout, 9, Cin) -> zero-pad Cin to 8 sublanes -> (Cout, 72).
    w9 = jnp.transpose(w_oihw, (0, 2, 3, 1)).reshape(cout, 9, cin)
    w_packed = jnp.pad(w9, ((0, 0), (0, 0), (0, 8 - cin))).reshape(cout, 72)
    b2 = bias.reshape(cout, 1)

    kernel = functools.partial(_conv3x3_sigmoid_kernel,
                               wp=wp, cin=cin, lpad=lpad, n=n)
    vmem = pl.BlockSpec(memory_space=pltpu.MemorySpace.VMEM)
    out_flat = pl.pallas_call(
        kernel,
        out_shape=jax.ShapeDtypeStruct((n, cout, lpad), x_nchw.dtype),
        in_specs=[vmem, vmem, vmem],
        out_specs=vmem,
        scratch_shapes=[pltpu.VMEM((72, L), jnp.float32)],
    )(xf, w_packed, b2)

    # Column p = y*wp + x: keep the first h*wp columns, drop the 2 padded columns/row.
    out = out_flat[:, :, :h * wp].reshape(n, cout, h, wp)[:, :, :, :w]
    return out


if __name__ == "__main__":
    key = jax.random.PRNGKey(0)
    kx, kw, kb = jax.random.split(key, 3)

    N, CIN, H, W, COUT = 2, 3, 16, 16, 12
    x = jax.random.normal(kx, (N, CIN, H, W), dtype=jnp.float32)
    # deterministic synthetic parameters (Conv2d(3, 12, 3x3) shapes, PyTorch OIHW)
    w_oihw = jax.random.normal(kw, (COUT, CIN, 3, 3), dtype=jnp.float32) * 0.1
    bias = jax.random.normal(kb, (COUT,), dtype=jnp.float32) * 0.1

    out = conv3x3_sigmoid(x, w_oihw, bias)
    jax.block_until_ready(out)

    # reference check with XLA conv (NCHW activation, OIHW weight)
    ref = jax.lax.conv_general_dilated(
        x, w_oihw, window_strides=(1, 1), padding="SAME",
        dimension_numbers=("NCHW", "OIHW", "NCHW"))
    ref = jax.nn.sigmoid(ref + bias.reshape(1, COUT, 1, 1))
    assert out.shape == (N, COUT, H, W)
    assert jnp.allclose(out, ref, atol=1e-5, rtol=1e-5)

    print("KERNEL_OK")
</pallas_src>

<mosaic_0001>
module attributes {stable_mosaic.version = 11 : i64} {
  func.func @_conv3x3_sigmoid_kernel(%arg0: memref<3x1152xf32, #tpu.memory_space<vmem>>, %arg1: memref<12x72xf32, #tpu.memory_space<vmem>>, %arg2: memref<12x1xf32, #tpu.memory_space<vmem>>, %arg3: memref<2x12x384xf32, #tpu.memory_space<vmem>>, %arg4: memref<72x768xf32, #tpu.memory_space<vmem>>) attributes {dimension_semantics = [], scalar_prefetch = 0 : i64, scratch_operands = 1 : i64, tpu.core_type = #tpu.core_type<tc>} {
    %cst = arith.constant 0.000000e+00 : f32
    %0 = vector.broadcast %cst : f32 to vector<72x768xf32>
    %c0 = arith.constant 0 : index
    %c0_0 = arith.constant 0 : index
    %1 = vector.load %arg4[%c0, %c0_0] : memref<72x768xf32, #tpu.memory_space<vmem>>, vector<72x768xf32>
    tpu.vector_store %arg4[%c0, %c0_0], %0 {strides = array<i32>} : memref<72x768xf32, #tpu.memory_space<vmem>>, vector<72x768xf32>,
    %c0_1 = arith.constant 0 : index
    %c0_2 = arith.constant 0 : index
    %2 = vector.load %arg0[%c0_1, %c0_2] : memref<3x1152xf32, #tpu.memory_space<vmem>>, vector<3x768xf32>
    %c0_3 = arith.constant 0 : index
    %c0_4 = arith.constant 0 : index
    %3 = vector.load %arg4[%c0_3, %c0_4] : memref<72x768xf32, #tpu.memory_space<vmem>>, vector<3x768xf32>
    tpu.vector_store %arg4[%c0_3, %c0_4], %2 {strides = array<i32>} : memref<72x768xf32, #tpu.memory_space<vmem>>, vector<3x768xf32>,
    %c0_5 = arith.constant 0 : index
    %c1 = arith.constant 1 : index
    %4 = vector.load %arg0[%c0_5, %c1] : memref<3x1152xf32, #tpu.memory_space<vmem>>, vector<3x768xf32>
    %c8 = arith.constant 8 : index
    %c0_6 = arith.constant 0 : index
    %5 = vector.load %arg4[%c8, %c0_6] : memref<72x768xf32, #tpu.memory_space<vmem>>, vector<3x768xf32>
    tpu.vector_store %arg4[%c8, %c0_6], %4 {strides = array<i32>} : memref<72x768xf32, #tpu.memory_space<vmem>>, vector<3x768xf32>,
    %c0_7 = arith.constant 0 : index
    %c2 = arith.constant 2 : index
    %6 = vector.load %arg0[%c0_7, %c2] : memref<3x1152xf32, #tpu.memory_space<vmem>>, vector<3x768xf32>
    %c16 = arith.constant 16 : index
    %c0_8 = arith.constant 0 : index
    %7 = vector.load %arg4[%c16, %c0_8] : memref<72x768xf32, #tpu.memory_space<vmem>>, vector<3x768xf32>
    tpu.vector_store %arg4[%c16, %c0_8], %6 {strides = array<i32>} : memref<72x768xf32, #tpu.memory_space<vmem>>, vector<3x768xf32>,
    %c0_9 = arith.constant 0 : index
    %c18 = arith.constant 18 : index
    %8 = vector.load %arg0[%c0_9, %c18] : memref<3x1152xf32, #tpu.memory_space<vmem>>, vector<3x768xf32>
    %c24 = arith.constant 24 : index
    %c0_10 = arith.constant 0 : index
    %9 = vector.load %arg4[%c24, %c0_10] : memref<72x768xf32, #tpu.memory_space<vmem>>, vector<3x768xf32>
    tpu.vector_store %arg4[%c24, %c0_10], %8 {strides = array<i32>} : memref<72x768xf32, #tpu.memory_space<vmem>>, vector<3x768xf32>,
    %c0_11 = arith.constant 0 : index
    %c19 = arith.constant 19 : index
    %10 = vector.load %arg0[%c0_11, %c19] : memref<3x1152xf32, #tpu.memory_space<vmem>>, vector<3x768xf32>
    %c32 = arith.constant 32 : index
    %c0_12 = arith.constant 0 : index
    %11 = vector.load %arg4[%c32, %c0_12] : memref<72x768xf32, #tpu.memory_space<vmem>>, vector<3x768xf32>
    tpu.vector_store %arg4[%c32, %c0_12], %10 {strides = array<i32>} : memref<72x768xf32, #tpu.memory_space<vmem>>, vector<3x768xf32>,
    %c0_13 = arith.constant 0 : index
    %c20 = arith.constant 20 : index
    %12 = vector.load %arg0[%c0_13, %c20] : memref<3x1152xf32, #tpu.memory_space<vmem>>, vector<3x768xf32>
    %c40 = arith.constant 40 : index
    %c0_14 = arith.constant 0 : index
    %13 = vector.load %arg4[%c40, %c0_14] : memref<72x768xf32, #tpu.memory_space<vmem>>, vector<3x768xf32>
    tpu.vector_store %arg4[%c40, %c0_14], %12 {strides = array<i32>} : memref<72x768xf32, #tpu.memory_space<vmem>>, vector<3x768xf32>,
    %c0_15 = arith.constant 0 : index
    %c36 = arith.constant 36 : index
    %14 = vector.load %arg0[%c0_15, %c36] : memref<3x1152xf32, #tpu.memory_space<vmem>>, vector<3x768xf32>
    %c48 = arith.constant 48 : index
    %c0_16 = arith.constant 0 : index
    %15 = vector.load %arg4[%c48, %c0_16] : memref<72x768xf32, #tpu.memory_space<vmem>>, vector<3x768xf32>
    tpu.vector_store %arg4[%c48, %c0_16], %14 {strides = array<i32>} : memref<72x768xf32, #tpu.memory_space<vmem>>, vector<3x768xf32>,
    %c0_17 = arith.constant 0 : index
    %c37 = arith.constant 37 : index
    %16 = vector.load %arg0[%c0_17, %c37] : memref<3x1152xf32, #tpu.memory_space<vmem>>, vector<3x768xf32>
    %c56 = arith.constant 56 : index
    %c0_18 = arith.constant 0 : index
    %17 = vector.load %arg4[%c56, %c0_18] : memref<72x768xf32, #tpu.memory_space<vmem>>, vector<3x768xf32>
    tpu.vector_store %arg4[%c56, %c0_18], %16 {strides = array<i32>} : memref<72x768xf32, #tpu.memory_space<vmem>>, vector<3x768xf32>,
    %c0_19 = arith.constant 0 : index
    %c38 = arith.constant 38 : index
    %18 = vector.load %arg0[%c0_19, %c38] : memref<3x1152xf32, #tpu.memory_space<vmem>>, vector<3x768xf32>
    %c64 = arith.constant 64 : index
    %c0_20 = arith.constant 0 : index
    %19 = vector.load %arg4[%c64, %c0_20] : memref<72x768xf32, #tpu.memory_space<vmem>>, vector<3x768xf32>
    tpu.vector_store %arg4[%c64, %c0_20], %18 {strides = array<i32>} : memref<72x768xf32, #tpu.memory_space<vmem>>, vector<3x768xf32>,
    %c0_21 = arith.constant 0 : index
    %c0_22 = arith.constant 0 : index
    %20 = vector.load %arg1[%c0_21, %c0_22] : memref<12x72xf32, #tpu.memory_space<vmem>>, vector<12x72xf32>
    %c0_23 = arith.constant 0 : index
    %c0_24 = arith.constant 0 : index
    %21 = vector.load %arg4[%c0_23, %c0_24] : memref<72x768xf32, #tpu.memory_space<vmem>>, vector<72x768xf32>
    %cst_25 = arith.constant dense<0.000000e+00> : vector<12x768xf32>
    %22 = tpu.matmul %20, %21, %cst_25 {dimension_numbers = #tpu.dot_dimension_numbers<[1], [0], [0], [1], [0, 0, 1, 1], [], []>} : vector<12x72xf32>, vector<72x768xf32>, vector<12x768xf32> -> vector<12x768xf32>
    %c0_26 = arith.constant 0 : index
    %c0_27 = arith.constant 0 : index
    %23 = vector.load %arg2[%c0_26, %c0_27] : memref<12x1xf32, #tpu.memory_space<vmem>>, vector<12x1xf32>
    %24 = vector.broadcast %23 : vector<12x1xf32> to vector<12x768xf32>
    %25 = arith.addf %22, %24 : vector<12x768xf32>
    %26 = arith.negf %25 : vector<12x768xf32>
    %27 = math.exp %26 : vector<12x768xf32>
    %cst_28 = arith.constant 1.000000e+00 : f32
    %28 = vector.broadcast %cst_28 : f32 to vector<12x768xf32>
    %29 = arith.addf %28, %27 : vector<12x768xf32>
    %30 = arith.divf %28, %29 : vector<12x768xf32>
    %31 = vector.extract_strided_slice %30 {offsets = [0, 0], sizes = [12, 384], strides = [1, 1]} : vector<12x768xf32> to vector<12x384xf32>
    %c0_29 = arith.constant 0 : index
    %c0_30 = arith.constant 0 : index
    %c0_31 = arith.constant 0 : index
    %32 = vector.load %arg3[%c0_29, %c0_30, %c0_31] : memref<2x12x384xf32, #tpu.memory_space<vmem>>, vector<1x12x384xf32>
    %33 = vector.shape_cast %32 : vector<1x12x384xf32> to vector<12x384xf32>
    %34 = vector.shape_cast %31 : vector<12x384xf32> to vector<1x12x384xf32>
    tpu.vector_store %arg3[%c0_29, %c0_30, %c0_31], %34 {strides = array<i32>} : memref<2x12x384xf32, #tpu.memory_space<vmem>>, vector<1x12x384xf32>,
    %35 = vector.extract_strided_slice %30 {offsets = [0, 384], sizes = [12, 384], strides = [1, 1]} : vector<12x768xf32> to vector<12x384xf32>
    %c1_32 = arith.constant 1 : index
    %c0_33 = arith.constant 0 : index
    %c0_34 = arith.constant 0 : index
    %36 = vector.load %arg3[%c1_32, %c0_33, %c0_34] : memref<2x12x384xf32, #tpu.memory_space<vmem>>, vector<1x12x384xf32>
    %37 = vector.shape_cast %36 : vector<1x12x384xf32> to vector<12x384xf32>
    %38 = vector.shape_cast %35 : vector<12x384xf32> to vector<1x12x384xf32>
    tpu.vector_store %arg3[%c1_32, %c0_33, %c0_34], %38 {strides = array<i32>} : memref<2x12x384xf32, #tpu.memory_space<vmem>>, vector<1x12x384xf32>,
    return
  }
}

</mosaic_0001>

<bundles_post_ra>
// kernel: conv3x3_sigmoid.1
= control target key start
LH: loop header
LB: loop body
LE: loop exit
PB: predicated region body
PF: predicated region fallthrough
CT: control target
= control target key end

     0   :  { %v1002_v3 = vmov 0.0   ;;  %s1003_s18 = smov 127   ;;  %s1004_s23 = smov 126   ;;  %v1011_v63 = vmov 0   ;;  %vm111_vm0 = vcmask 1039360   ;;  %vm155_vm1 = vcmask 1031168   ;;  %s1443_s0 = inlined_call_operand.vmem [shape: f32[3,1152], index: 0, kind: input, shape index: {}]   ;;  %s1444_s2 = inlined_call_operand.vmem [shape: f32[12,1], index: 2, kind: input, shape index: {}]   ;;  %s1445_s1 = inlined_call_operand.vmem [shape: f32[12,72], index: 1, kind: input, shape index: {}]   ;;  %s1446_s3 = inlined_call_operand.vmem [shape: f32[2,12,384], index: 3, kind: output, shape index: {}]  }
   0x1   :  { %v1035_v0 = vld [vmem:[%s1443_s0 + $0x10] sm:$0x77]  ;;  %v1040_v1 = vld [vmem:[%s1443_s0 + $0x8] sm:$0x77]  ;;  %v1045_v2 = vld [vmem:[%s1443_s0] sm:$0x77]  ;;  %577 = vmatprep.mubr.f32.mxu0 %v1002_v3  ;;  %654 = vmatprep.mubr.f32.mxu1 %v1002_v3 }
   0x2   :  { %22 = vst [vmem:[#allocation2 + $0x40] sm:$0xff] %v1002_v3  ;;  %23 = vst [vmem:[#allocation2 + $0x48] sm:$0xff] %v1002_v3  ;;  %105 = vrot.lane.b32.xlu1 %v1035_v0, %s1003_s18  ;;  %101 = vrot.lane.b32.xlu0 %v1040_v1, %s1003_s18  ;;  %v95_v4 = vcombine.high %v1040_v1, %v1040_v1  ;;  %v94_v5 = vcombine.high %v1045_v2, %v1045_v2  ;;  %v130_v6 = vld [vmem:[%s1443_s0] sm:$0x77]  ;;  %v131_v8 = vld [vmem:[%s1443_s0 + $0x8] sm:$0x77] }
   0x3   :  { %14 = vst [vmem:[#allocation2] sm:$0xff] %v1002_v3  ;;  %15 = vst [vmem:[#allocation2 + $0x8] sm:$0xff] %v1002_v3  ;;  %v138_v7 = vcombine.high %v130_v6, %v130_v6  ;;  %v139_v9 = vcombine.high %v131_v8, %v131_v8  ;;  %v174_v10 = vld [vmem:[%s1443_s0] sm:$0x77]  ;;  %v69_v12 = vld [vmem:[%s1443_s0 + $0x8] sm:$0x77]  ;;  %v96_v42 = vcombine.high %v1035_v0, %v1035_v0  ;;  %925 = vset.pattern.permute.xlu0 %v1011_v63 }
   0x4   :  { %16 = vst [vmem:[#allocation2 + $0x10] sm:$0xff] %v1002_v3  ;;  %17 = vst [vmem:[#allocation2 + $0x18] sm:$0xff] %v1002_v3  ;;  %v68_v11 = vld [vmem:[%s1443_s0] sm:$0x77]  ;;  %v182_v13 = vcombine.high %v174_v10, %v174_v10  ;;  %v75_v15 = vcombine.high %v69_v12, %v69_v12  ;;  %v1136_v16 = vld [vmem:[%s1443_s0 + $0x10] sm:$0x77]  ;;  %926 = vset.pattern.permute.xlu1 %v1011_v63 }
   0x5   :  { %18 = vst [vmem:[#allocation2 + $0x20] sm:$0xff] %v1002_v3  ;;  %19 = vst [vmem:[#allocation2 + $0x28] sm:$0xff] %v1002_v3  ;;  %v74_v14 = vcombine.high %v68_v11, %v68_v11  ;;  %v175_v17 = vld [vmem:[%s1443_s0 + $0x8] sm:$0x77]  ;;  %s1005_s7 = smov 110   ;;  %s1006_s14 = smov 109   ;;  %v140_v49 = vcombine.high %v1136_v16, %v1136_v16 }
   0x6   :  { %20 = vst [vmem:[#allocation2 + $0x30] sm:$0xff] %v1002_v3  ;;  %21 = vst [vmem:[#allocation2 + $0x38] sm:$0xff] %v1002_v3  ;;  %103 = vrot.lane.b32.xlu1 %v95_v4, %s1003_s18  ;;  %99 = vrot.lane.b32.xlu0 %v94_v5, %s1003_s18  ;;  %v183_v18 = vcombine.high %v175_v17, %v175_v17  ;;  %v1149_v19 = vld [vmem:[%s1443_s0 + $0x10] sm:$0x77]  ;;  %v218_v20 = vld [vmem:[%s1443_s0] sm:$0x77] }
   0x7   :  { %24 = vst [vmem:[#allocation2 + $0x50] sm:$0xff] %v1002_v3  ;;  %25 = vst [vmem:[#allocation2 + $0x58] sm:$0xff] %v1002_v3  ;;  %v226_v21 = vcombine.high %v218_v20, %v218_v20  ;;  %v219_v22 = vld [vmem:[%s1443_s0 + $0x8] sm:$0x77]  ;;  %v262_v24 = vld [vmem:[%s1443_s0] sm:$0x77]  ;;  %v184_v51 = vcombine.high %v1149_v19, %v1149_v19 }
   0x8   :  { %26 = vst [vmem:[#allocation2 + $0x60] sm:$0xff] %v1002_v3  ;;  %27 = vst [vmem:[#allocation2 + $0x68] sm:$0xff] %v1002_v3  ;;  %v227_v23 = vcombine.high %v219_v22, %v219_v22  ;;  %v270_v25 = vcombine.high %v262_v24, %v262_v24  ;;  %v1170_v26 = vld [vmem:[%s1443_s0 + $0x10] sm:$0x77]  ;;  %v263_v27 = vld [vmem:[%s1443_s0 + $0x8] sm:$0x77] }
   0x9   :  { %28 = vst [vmem:[#allocation2 + $0x70] sm:$0xff] %v1002_v3  ;;  %29 = vst [vmem:[#allocation2 + $0x78] sm:$0xff] %v1002_v3  ;;  %s1007_s22 = smov 108   ;;  %v271_v28 = vcombine.high %v263_v27, %v263_v27  ;;  %v264_v29 = vld [vmem:[%s1443_s0 + $0x10] sm:$0x77]  ;;  %s1008_s30 = smov 92   ;;  %v228_v53 = vcombine.high %v1170_v26, %v1170_v26 }
   0xa   :  { %30 = vst [vmem:[#allocation2 + $0x80] sm:$0xff] %v1002_v3  ;;  %31 = vst [vmem:[#allocation2 + $0x88] sm:$0xff] %v1002_v3  ;;  %143 = vrot.lane.b32.xlu1 %v138_v7, %s1004_s23  ;;  %97 = vrot.lane.b32.xlu0 %v1045_v2, %s1003_s18  ;;  %v306_v30 = vld [vmem:[%s1443_s0] sm:$0x77]  ;;  %v307_v32 = vld [vmem:[%s1443_s0 + $0x8] sm:$0x77]  ;;  %v272_v55 = vcombine.high %v264_v29, %v264_v29 }
   0xb   :  { %32 = vst [vmem:[#allocation2 + $0x90] sm:$0xff] %v1002_v3  ;;  %33 = vst [vmem:[#allocation2 + $0x98] sm:$0xff] %v1002_v3  ;;  %v314_v31 = vcombine.high %v306_v30, %v306_v30  ;;  %v315_v33 = vcombine.high %v307_v32, %v307_v32  ;;  %v350_v34 = vld [vmem:[%s1443_s0] sm:$0x77]  ;;  %v308_v36 = vld [vmem:[%s1443_s0 + $0x10] sm:$0x77] }
   0xc   :  { %34 = vst [vmem:[#allocation2 + $0xa0] sm:$0xff] %v1002_v3  ;;  %35 = vst [vmem:[#allocation2 + $0xa8] sm:$0xff] %v1002_v3  ;;  %v358_v35 = vcombine.high %v350_v34, %v350_v34  ;;  %v351_v37 = vld [vmem:[%s1443_s0 + $0x8] sm:$0x77]  ;;  %v70_v38 = vld [vmem:[%s1443_s0 + $0x10] sm:$0x77]  ;;  %v316_v57 = vcombine.high %v308_v36, %v308_v36 }
   0xd   :  { %36 = vst [vmem:[#allocation2 + $0xb0] sm:$0xff] %v1002_v3  ;;  %37 = vst [vmem:[#allocation2 + $0xb8] sm:$0xff] %v1002_v3  ;;  %s1009_s13 = smov 91   ;;  %v359_v39 = vcombine.high %v351_v37, %v351_v37  ;;  %v76_v40 = vcombine.high %v70_v38, %v70_v38  ;;  %v352_v41 = vld [vmem:[%s1443_s0 + $0x10] sm:$0x77]  ;;  %s1010_s26 = smov 90  }
   0xe   :  { %38 = vst [vmem:[#allocation2 + $0xc0] sm:$0xff] %v1002_v3  ;;  %39 = vst [vmem:[#allocation2 + $0xc8] sm:$0xff] %v1002_v3  ;;  %147 = vrot.lane.b32.xlu1 %v139_v9, %s1004_s23  ;;  %145 = vrot.lane.b32.xlu0 %v131_v8, %s1004_s23  ;;  %v394_v43 = vld [vmem:[%s1443_s0] sm:$0x77]  ;;  %v89_v45 = vld [vmem:[%s1443_s0 + $0x18] sm:$0x7]  ;;  %v360_v59 = vcombine.high %v352_v41, %v352_v41 }
   0xf   :  { %40 = vst [vmem:[#allocation2 + $0xd0] sm:$0xff] %v1002_v3  ;;  %41 = vst [vmem:[#allocation2 + $0xd8] sm:$0xff] %v1002_v3  ;;  %v402_v44 = vcombine.high %v394_v43, %v394_v43  ;;  %v395_v46 = vld [vmem:[%s1443_s0 + $0x8] sm:$0x77]  ;;  %v396_v48 = vld [vmem:[%s1443_s0 + $0x10] sm:$0x77] }
  0x10   :  { %42 = vst [vmem:[#allocation2 + $0xe0] sm:$0xff] %v1002_v3  ;;  %43 = vst [vmem:[#allocation2 + $0xe8] sm:$0xff] %v1002_v3  ;;  %v403_v47 = vcombine.high %v395_v46, %v395_v46  ;;  %v133_v50 = vld [vmem:[%s1443_s0 + $0x18] sm:$0x7]  ;;  %v404_v61 = vcombine.high %v396_v48, %v396_v48  ;;  %v494_v0 = vld [vmem:[%s1444_s2] sm:$0xff]  ;;  %vm199_vm2 = vcmask 900096  }
  0x11   :  { %44 = vst [vmem:[#allocation2 + $0xf0] sm:$0xff] %v1002_v3  ;;  %45 = vst [vmem:[#allocation2 + $0xf8] sm:$0xff] %v1002_v3  ;;  %v177_v52 = vld [vmem:[%s1443_s0 + $0x18] sm:$0x7]  ;;  %v495_v1 = vld [vmem:[%s1444_s2 + $0x8] sm:$0xf] }
  0x12   :  { %46 = vst [vmem:[#allocation2 + $0x100] sm:$0xff] %v1002_v3  ;;  %47 = vst [vmem:[#allocation2 + $0x108] sm:$0xff] %v1002_v3  ;;  %187 = vrot.lane.b32.xlu1 %v182_v13, %s1005_s7  ;;  %149 = vrot.lane.b32.xlu0 %v1136_v16, %s1004_s23  ;;  %v221_v54 = vld [vmem:[%s1443_s0 + $0x18] sm:$0x7]  ;;  %vm243_vm3 = vcmask 891904   ;;  %vm287_vm4 = vcmask 883712  }
  0x13   :  { %48 = vst [vmem:[#allocation2 + $0x110] sm:$0xff] %v1002_v3  ;;  %49 = vst [vmem:[#allocation2 + $0x118] sm:$0xff] %v1002_v3  ;;  %v265_v56 = vld [vmem:[%s1443_s0 + $0x18] sm:$0x7]  ;;  %vm331_vm5 = vcmask 752640   ;;  %vm375_vm6 = vcmask 744448  }
  0x14   :  { %50 = vst [vmem:[#allocation2 + $0x120] sm:$0xff] %v1002_v3  ;;  %51 = vst [vmem:[#allocation2 + $0x128] sm:$0xff] %v1002_v3  ;;  %v309_v58 = vld [vmem:[%s1443_s0 + $0x18] sm:$0x7]  ;;  %vm419_vm7 = vcmask 736256   ;;  %vm506_vm8 = vcmask 588800  }
  0x15   :  { %52 = vst [vmem:[#allocation2 + $0x130] sm:$0xff] %v1002_v3  ;;  %53 = vst [vmem:[#allocation2 + $0x138] sm:$0xff] %v1002_v3  ;;  %v353_v60 = vld [vmem:[%s1443_s0 + $0x18] sm:$0x7] }
  0x16   :  { %54 = vst [vmem:[#allocation2 + $0x140] sm:$0xff] %v1002_v3  ;;  %55 = vst [vmem:[#allocation2 + $0x148] sm:$0xff] %v1002_v3  ;;  %191 = vrot.lane.b32.xlu1 %v183_v18, %s1005_s7  ;;  %189 = vrot.lane.b32.xlu0 %v175_v17, %s1005_s7  ;;  %v397_v62 = vld [vmem:[%s1443_s0 + $0x18] sm:$0x7] }
  0x17   :  { %56 = vst [vmem:[#allocation2 + $0x150] sm:$0xff] %v1002_v3  ;;  %57 = vst [vmem:[#allocation2 + $0x158] sm:$0xff] %v1002_v3 }
  0x18   :  { %58 = vst [vmem:[#allocation2 + $0x160] sm:$0xff] %v1002_v3  ;;  %59 = vst [vmem:[#allocation2 + $0x168] sm:$0xff] %v1002_v3 }
  0x19   :  { %60 = vst [vmem:[#allocation2 + $0x170] sm:$0xff] %v1002_v3  ;;  %61 = vst [vmem:[#allocation2 + $0x178] sm:$0xff] %v1002_v3 }
  0x1a   :  { %62 = vst [vmem:[#allocation2 + $0x180] sm:$0xff] %v1002_v3  ;;  %63 = vst [vmem:[#allocation2 + $0x188] sm:$0xff] %v1002_v3  ;;  %141 = vrot.lane.b32.xlu1 %v130_v6, %s1004_s23  ;;  %193 = vrot.lane.b32.xlu0 %v1149_v19, %s1005_s7 }
  0x1b   :  { %64 = vst [vmem:[#allocation2 + $0x190] sm:$0xff] %v1002_v3  ;;  %65 = vst [vmem:[#allocation2 + $0x198] sm:$0xff] %v1002_v3 }
  0x1c   :  { %66 = vst [vmem:[#allocation2 + $0x1a0] sm:$0xff] %v1002_v3  ;;  %67 = vst [vmem:[#allocation2 + $0x1a8] sm:$0xff] %v1002_v3 }
  0x1d   :  { %80 = vst [vmem:[#allocation2] sm:$0x7] %v68_v11  ;;  %82 = vst [vmem:[#allocation2 + $0x10] sm:$0x7] %v69_v12 }
  0x1e   :  { %81 = vst [vmem:[#allocation2 + $0x8] sm:$0x7] %v74_v14  ;;  %83 = vst [vmem:[#allocation2 + $0x18] sm:$0x7] %v75_v15  ;;  %231 = vrot.lane.b32.xlu1 %v226_v21, %s1006_s14  ;;  %185 = vrot.lane.b32.xlu0 %v174_v10, %s1005_s7 }
  0x1f   :  { %84 = vst [vmem:[#allocation2 + $0x20] sm:$0x7] %v70_v38  ;;  %85 = vst [vmem:[#allocation2 + $0x28] sm:$0x7] %v76_v40 }
  0x22   :  { %235 = vrot.lane.b32.xlu1 %v227_v23, %s1006_s14  ;;  %233 = vrot.lane.b32.xlu0 %v219_v22, %s1006_s14 }
  0x24   :  { %v442_v15 = vld [vmem:[#allocation2 + $0x10] sm:$0xff] }
  0x25   :  { %v441_v13 = vld [vmem:[#allocation2 + $0x8] sm:$0xff]  ;;  %v443_v14 = vld [vmem:[#allocation2 + $0x18] sm:$0xff] }
  0x26   :  { %275 = vrot.lane.b32.xlu1 %v270_v25, %s1007_s22  ;;  %237 = vrot.lane.b32.xlu0 %v1170_v26, %s1006_s14  ;;  %v440_v26 = vld [vmem:[#allocation2] sm:$0xff] }
  0x2a   :  { %279 = vrot.lane.b32.xlu1 %v271_v28, %s1007_s22  ;;  %277 = vrot.lane.b32.xlu0 %v263_v27, %s1007_s22 }
  0x2e   :  { %229 = vrot.lane.b32.xlu1 %v218_v20, %s1006_s14  ;;  %281 = vrot.lane.b32.xlu0 %v264_v29, %s1007_s22 }
  0x32   :  { %319 = vrot.lane.b32.xlu1 %v314_v31, %s1008_s30  ;;  %273 = vrot.lane.b32.xlu0 %v262_v24, %s1007_s22 }
  0x36   :  { %323 = vrot.lane.b32.xlu1 %v315_v33, %s1008_s30  ;;  %321 = vrot.lane.b32.xlu0 %v307_v32, %s1008_s30 }
  0x3a   :  { %363 = vrot.lane.b32.xlu1 %v358_v35, %s1009_s13  ;;  %325 = vrot.lane.b32.xlu0 %v308_v36, %s1008_s30 }
  0x3e   :  { %367 = vrot.lane.b32.xlu1 %v359_v39, %s1009_s13  ;;  %365 = vrot.lane.b32.xlu0 %v351_v37, %s1009_s13 }
  0x42   :  { %317 = vrot.lane.b32.xlu1 %v306_v30, %s1008_s30  ;;  %369 = vrot.lane.b32.xlu0 %v352_v41, %s1009_s13 }
  0x46   :  { %107 = vrot.lane.b32.xlu1 %v96_v42, %s1003_s18  ;;  %361 = vrot.lane.b32.xlu0 %v350_v34, %s1009_s13 }
  0x4a   :  { %407 = vrot.lane.b32.xlu1 %v402_v44, %s1010_s26  ;;  %109 = vrot.lane.b32.xlu0 %v89_v45, %s1003_s18 }
  0x4e   :  { %411 = vrot.lane.b32.xlu1 %v403_v47, %s1010_s26  ;;  %409 = vrot.lane.b32.xlu0 %v395_v46, %s1010_s26 }
  0x52   :  { %405 = vrot.lane.b32.xlu1 %v394_v43, %s1010_s26  ;;  %413 = vrot.lane.b32.xlu0 %v396_v48, %s1010_s26 }
  0x56   :  { %153 = vrot.lane.b32.xlu1 %v133_v50, %s1004_s23  ;;  %151 = vrot.lane.b32.xlu0 %v140_v49, %s1004_s23 }
  0x5a   :  { %197 = vrot.lane.b32.xlu1 %v177_v52, %s1005_s7  ;;  %195 = vrot.lane.b32.xlu0 %v184_v51, %s1005_s7 }
  0x5e   :  { %241 = vrot.lane.b32.xlu1 %v221_v54, %s1006_s14  ;;  %239 = vrot.lane.b32.xlu0 %v228_v53, %s1006_s14 }
  0x62   :  { %285 = vrot.lane.b32.xlu1 %v265_v56, %s1007_s22  ;;  %283 = vrot.lane.b32.xlu0 %v272_v55, %s1007_s22 }
  0x66   :  { %329 = vrot.lane.b32.xlu1 %v309_v58, %s1008_s30  ;;  %327 = vrot.lane.b32.xlu0 %v316_v57, %s1008_s30 }
  0x6a   :  { %373 = vrot.lane.b32.xlu1 %v353_v60, %s1009_s13  ;;  %371 = vrot.lane.b32.xlu0 %v360_v59, %s1009_s13 }
  0x6e   :  { %415 = vrot.lane.b32.xlu0 %v404_v61, %s1010_s26  ;;  %417 = vrot.lane.b32.xlu1 %v397_v62, %s1010_s26 }
  0x72   :  { %498 = vperm.xlu0 %925, %v494_v0   ;;  %503 = vperm.xlu1 %926, %v495_v1  }
  0x74   :  { %v1285_v2 = vpop.permute.xlu1 %105  ;;  %v102_v4 = vpop.permute.xlu0 %101 }
  0x78   :  { %v104_v5 = vpop.permute.xlu1 %103  ;;  %v100_v6 = vpop.permute.xlu0 %99 }
  0x79   :  { %v114_v7 = vsel %vm111_vm0, %v102_v4, %v104_v5  ;;  %v115_v8 = vsel %vm111_vm0, %v104_v5, %v1285_v2  ;;  %v113_v9 = vsel %vm111_vm0, %v100_v6, %v102_v4 }
  0x7a   :  { %126 = vst [vmem:[#allocation2 + $0x40] sm:$0x7] %v114_v7  ;;  %127 = vst [vmem:[#allocation2 + $0x48] sm:$0x7] %v115_v8 }
  0x7b   :  { %125 = vst [vmem:[#allocation2 + $0x38] sm:$0x7] %v113_v9 }
  0x7c   :  { %v144_v10 = vpop.permute.xlu1 %143  ;;  %v98_v11 = vpop.permute.xlu0 %97 }
  0x7d   :  { %v112_v12 = vsel %vm111_vm0, %v98_v11, %v100_v6 }
  0x7e   :  { %124 = vst [vmem:[#allocation2 + $0x30] sm:$0x7] %v112_v12 }
  0x80   :  { %v148_v16 = vpop.permute.xlu1 %147  ;;  %v146_v17 = vpop.permute.xlu0 %145 }
  0x81   :  { %v157_v18 = vsel %vm155_vm1, %v144_v10, %v146_v17  ;;  %v158_v19 = vsel %vm155_vm1, %v146_v17, %v148_v16  ;;  %v449_v21 = vld [vmem:[#allocation2 + $0x48] sm:$0xff]  ;;  %v448_v22 = vld [vmem:[#allocation2 + $0x40] sm:$0xff] }
  0x82   :  { %v447_v20 = vld [vmem:[#allocation2 + $0x38] sm:$0xff]  ;;  %169 = vst [vmem:[#allocation2 + $0x68] sm:$0x7] %v157_v18  ;;  %170 = vst [vmem:[#allocation2 + $0x70] sm:$0x7] %v158_v19  ;;  %v873_v24 = vpack.c.bf16 %v449_v21, %v443_v14  ;;  %v875_v25 = vpack.c.bf16 %v448_v22, %v442_v15 }
  0x83   :  { %v857_v23 = vpack.c.bf16 %v447_v20, %v441_v13 }
  0x84   :  { %v188_v27 = vpop.permute.xlu1 %187  ;;  %v1294_v28 = vpop.permute.xlu0 %149  ;;  %874 = vmatprep.subr.bf16.mxu1 %v873_v24 }
  0x85   :  { %858 = vmatprep.subr.bf16.mxu0 %v857_v23  ;;  %v159_v29 = vsel %vm155_vm1, %v148_v16, %v1294_v28  ;;  %876 = vmatpush1.bf16.msra.mxu1 %v875_v25  ;;  %v446_v30 = vld [vmem:[#allocation2 + $0x30] sm:$0xff] }
  0x86   :  { %171 = vst [vmem:[#allocation2 + $0x78] sm:$0x7] %v159_v29  ;;  %v859_v31 = vpack.c.bf16 %v446_v30, %v440_v26 }
  0x88   :  { %v192_v32 = vpop.permute.xlu1 %191  ;;  %v190_v33 = vpop.permute.xlu0 %189  ;;  %860 = vmatpush1.bf16.msra.mxu0 %v859_v31 }
  0x89   :  { %v201_v34 = vsel %vm199_vm2, %v188_v27, %v190_v33  ;;  %v202_v35 = vsel %vm199_vm2, %v190_v33, %v192_v32  ;;  %v453_v43 = vld [vmem:[#allocation2 + $0x68] sm:$0xff]  ;;  %v454_v54 = vld [vmem:[#allocation2 + $0x70] sm:$0xff] }
  0x8a   :  { %213 = vst [vmem:[#allocation2 + $0x98] sm:$0x7] %v201_v34  ;;  %214 = vst [vmem:[#allocation2 + $0xa0] sm:$0x7] %v202_v35 }
  0x8c   :  { %v142_v36 = vpop.permute.xlu1 %141  ;;  %v1300_v37 = vpop.permute.xlu0 %193 }
  0x8d   :  { %v156_v38 = vsel %vm155_vm1, %v142_v36, %v144_v10  ;;  %v203_v39 = vsel %vm199_vm2, %v192_v32, %v1300_v37  ;;  %v455_v51 = vld [vmem:[#allocation2 + $0x78] sm:$0xff] }
  0x8e   :  { %168 = vst [vmem:[#allocation2 + $0x60] sm:$0x7] %v156_v38  ;;  %215 = vst [vmem:[#allocation2 + $0xa8] sm:$0x7] %v203_v39 }
  0x90   :  { %v232_v40 = vpop.permute.xlu1 %231  ;;  %v186_v41 = vpop.permute.xlu0 %185 }
  0x91   :  { %v200_v42 = vsel %vm199_vm2, %v186_v41, %v188_v27  ;;  %v459_v44 = vld [vmem:[#allocation2 + $0x98] sm:$0xff]  ;;  %v460_v48 = vld [vmem:[#allocation2 + $0xa0] sm:$0xff] }
  0x92   :  { %212 = vst [vmem:[#allocation2 + $0x90] sm:$0x7] %v200_v42  ;;  %v861_v45 = vpack.c.bf16 %v459_v44, %v453_v43  ;;  %v879_v55 = vpack.c.bf16 %v460_v48, %v454_v54 }
  0x94   :  { %v236_v46 = vpop.permute.xlu1 %235  ;;  %v234_v47 = vpop.permute.xlu0 %233  ;;  %862 = vmatprep.subr.bf16.mxu0 %v861_v45 }
  0x95   :  { %v245_v49 = vsel %vm243_vm3, %v232_v40, %v234_v47  ;;  %v246_v50 = vsel %vm243_vm3, %v234_v47, %v236_v46  ;;  %v461_v52 = vld [vmem:[#allocation2 + $0xa8] sm:$0xff]  ;;  %v452_v59 = vld [vmem:[#allocation2 + $0x60] sm:$0xff] }
  0x96   :  { %257 = vst [vmem:[#allocation2 + $0xc8] sm:$0x7] %v245_v49  ;;  %258 = vst [vmem:[#allocation2 + $0xd0] sm:$0x7] %v246_v50  ;;  %v877_v53 = vpack.c.bf16 %v461_v52, %v455_v51 }
  0x98   :  { %v276_v56 = vpop.permute.xlu1 %275  ;;  %v1308_v57 = vpop.permute.xlu0 %237  ;;  %878 = vmatprep.subr.bf16.mxu1 %v877_v53 }
  0x99   :  { %v247_v58 = vsel %vm243_vm3, %v236_v46, %v1308_v57  ;;  %880 = vmatpush1.bf16.msra.mxu1 %v879_v55  ;;  %v458_v60 = vld [vmem:[#allocation2 + $0x90] sm:$0xff] }
  0x9a   :  { %259 = vst [vmem:[#allocation2 + $0xd8] sm:$0x7] %v247_v58  ;;  %v863_v61 = vpack.c.bf16 %v458_v60, %v452_v59 }
  0x9c   :  { %v280_v62 = vpop.permute.xlu1 %279  ;;  %v278_v63 = vpop.permute.xlu0 %277  ;;  %864 = vmatpush1.bf16.msra.mxu0 %v863_v61 }
  0x9d   :  { %v289_v0 = vsel %vm287_vm4, %v276_v56, %v278_v63  ;;  %v290_v1 = vsel %vm287_vm4, %v278_v63, %v280_v62  ;;  %v465_v11 = vld [vmem:[#allocation2 + $0xc8] sm:$0xff]  ;;  %v466_v22 = vld [vmem:[#allocation2 + $0xd0] sm:$0xff] }
  0x9e   :  { %301 = vst [vmem:[#allocation2 + $0xf8] sm:$0x7] %v289_v0  ;;  %302 = vst [vmem:[#allocation2 + $0x100] sm:$0x7] %v290_v1 }
  0xa0   :  { %v230_v4 = vpop.permute.xlu1 %229  ;;  %v1314_v5 = vpop.permute.xlu0 %281 }
  0xa1   :  { %v244_v6 = vsel %vm243_vm3, %v230_v4, %v232_v40  ;;  %v291_v7 = vsel %vm287_vm4, %v280_v62, %v1314_v5  ;;  %v467_v19 = vld [vmem:[#allocation2 + $0xd8] sm:$0xff] }
  0xa2   :  { %256 = vst [vmem:[#allocation2 + $0xc0] sm:$0x7] %v244_v6  ;;  %303 = vst [vmem:[#allocation2 + $0x108] sm:$0x7] %v291_v7 }
  0xa4   :  { %v320_v8 = vpop.permute.xlu1 %319  ;;  %v274_v9 = vpop.permute.xlu0 %273 }
  0xa5   :  { %v288_v10 = vsel %vm287_vm4, %v274_v9, %v276_v56  ;;  %v471_v12 = vld [vmem:[#allocation2 + $0xf8] sm:$0xff]  ;;  %v472_v16 = vld [vmem:[#allocation2 + $0x100] sm:$0xff] }
  0xa6   :  { %300 = vst [vmem:[#allocation2 + $0xf0] sm:$0x7] %v288_v10  ;;  %v865_v13 = vpack.c.bf16 %v471_v12, %v465_v11  ;;  %v883_v23 = vpack.c.bf16 %v472_v16, %v466_v22  ;;  %v445_v11 = vld [vmem:[#allocation2 + $0x28] sm:$0xff] }
  0xa8   :  { %v324_v14 = vpop.permute.xlu1 %323  ;;  %v322_v15 = vpop.permute.xlu0 %321  ;;  %866 = vmatprep.subr.bf16.mxu0 %v865_v13 }
  0xa9   :  { %v333_v17 = vsel %vm331_vm5, %v320_v8, %v322_v15  ;;  %v334_v18 = vsel %vm331_vm5, %v322_v15, %v324_v14  ;;  %v473_v20 = vld [vmem:[#allocation2 + $0x108] sm:$0xff]  ;;  %v464_v27 = vld [vmem:[#allocation2 + $0xc0] sm:$0xff] }
  0xaa   :  { %345 = vst [vmem:[#allocation2 + $0x128] sm:$0x7] %v333_v17  ;;  %346 = vst [vmem:[#allocation2 + $0x130] sm:$0x7] %v334_v18  ;;  %v881_v21 = vpack.c.bf16 %v473_v20, %v467_v19  ;;  %v444_v15 = vld [vmem:[#allocation2 + $0x20] sm:$0xff] }
  0xac   :  { %v364_v24 = vpop.permute.xlu1 %363  ;;  %v1322_v25 = vpop.permute.xlu0 %325  ;;  %882 = vmatprep.subr.bf16.mxu1 %v881_v21  ;;  %v1353_v21 = vld [vmem:[%s1445_s1] sm:$0xff] }
  0xad   :  { %v335_v26 = vsel %vm331_vm5, %v324_v14, %v1322_v25  ;;  %884 = vmatpush1.bf16.msra.mxu1 %v883_v23  ;;  %v470_v29 = vld [vmem:[#allocation2 + $0xf0] sm:$0xff] }
  0xae   :  { %347 = vst [vmem:[#allocation2 + $0x138] sm:$0x7] %v335_v26  ;;  %v867_v30 = vpack.c.bf16 %v470_v29, %v464_v27  ;;  %v1365_v29 = vld [vmem:[%s1445_s1 + $0x8] sm:$0xf] }
  0xb0   :  { %v368_v31 = vpop.permute.xlu1 %367  ;;  %v366_v32 = vpop.permute.xlu0 %365  ;;  %868 = vmatpush1.bf16.msra.mxu0 %v867_v30 }
  0xb1   :  { %v377_v33 = vsel %vm375_vm6, %v364_v24, %v366_v32  ;;  %v378_v34 = vsel %vm375_vm6, %v366_v32, %v368_v31  ;;  %v477_v44 = vld [vmem:[#allocation2 + $0x128] sm:$0xff]  ;;  %v478_v54 = vld [vmem:[#allocation2 + $0x130] sm:$0xff] }
  0xb2   :  { %389 = vst [vmem:[#allocation2 + $0x158] sm:$0x7] %v377_v33  ;;  %390 = vst [vmem:[#allocation2 + $0x160] sm:$0x7] %v378_v34 }
  0xb4   :  { %v318_v35 = vpop.permute.xlu1 %317  ;;  %v1328_v36 = vpop.permute.xlu0 %369 }
  0xb5   :  { %v332_v38 = vsel %vm331_vm5, %v318_v35, %v320_v8  ;;  %v379_v39 = vsel %vm375_vm6, %v368_v31, %v1328_v36  ;;  %v479_v51 = vld [vmem:[#allocation2 + $0x138] sm:$0xff] }
  0xb6   :  { %344 = vst [vmem:[#allocation2 + $0x120] sm:$0x7] %v332_v38  ;;  %391 = vst [vmem:[#allocation2 + $0x168] sm:$0x7] %v379_v39 }
  0xb8   :  { %v108_v40 = vpop.permute.xlu1 %107  ;;  %v362_v41 = vpop.permute.xlu0 %361 }
  0xb9   :  { %v116_v42 = vsel %vm111_vm0, %v1285_v2, %v108_v40  ;;  %v376_v43 = vsel %vm375_vm6, %v362_v41, %v364_v24  ;;  %v483_v45 = vld [vmem:[#allocation2 + $0x158] sm:$0xff]  ;;  %v484_v49 = vld [vmem:[#allocation2 + $0x160] sm:$0xff] }
  0xba   :  { %128 = vst [vmem:[#allocation2 + $0x50] sm:$0x7] %v116_v42  ;;  %388 = vst [vmem:[#allocation2 + $0x150] sm:$0x7] %v376_v43  ;;  %v869_v46 = vpack.c.bf16 %v483_v45, %v477_v44  ;;  %v887_v2 = vpack.c.bf16 %v484_v49, %v478_v54 }
  0xbc   :  { %v408_v47 = vpop.permute.xlu1 %407  ;;  %v110_v48 = vpop.permute.xlu0 %109  ;;  %870 = vmatprep.subr.bf16.mxu0 %v869_v46 }
  0xbd   :  { %v117_v50 = vsel %vm111_vm0, %v108_v40, %v110_v48  ;;  %v485_v52 = vld [vmem:[#allocation2 + $0x168] sm:$0xff]  ;;  %v476_v60 = vld [vmem:[#allocation2 + $0x120] sm:$0xff] }
  0xbe   :  { %129 = vst [vmem:[#allocation2 + $0x58] sm:$0x7] %v117_v50  ;;  %v885_v53 = vpack.c.bf16 %v485_v52, %v479_v51 }
  0xc0   :  { %v412_v55 = vpop.permute.xlu1 %411  ;;  %v410_v56 = vpop.permute.xlu0 %409  ;;  %886 = vmatprep.subr.bf16.mxu1 %v885_v53 }
  0xc1   :  { %v421_v58 = vsel %vm419_vm7, %v408_v47, %v410_v56  ;;  %v422_v59 = vsel %vm419_vm7, %v410_v56, %v412_v55  ;;  %888 = vmatpush1.bf16.msra.mxu1 %v887_v2  ;;  %v482_v61 = vld [vmem:[#allocation2 + $0x150] sm:$0xff] }
  0xc2   :  { %433 = vst [vmem:[#allocation2 + $0x188] sm:$0x7] %v421_v58  ;;  %434 = vst [vmem:[#allocation2 + $0x190] sm:$0x7] %v422_v59  ;;  %v871_v62 = vpack.c.bf16 %v482_v61, %v476_v60  ;;  %v450_v16 = vld [vmem:[#allocation2 + $0x50] sm:$0xff] }
  0xc3   :  { %v891_v23 = vpack.c.bf16 %v450_v16, %v444_v15 }
  0xc4   :  { %v406_v63 = vpop.permute.xlu1 %405  ;;  %v1339_v0 = vpop.permute.xlu0 %413  ;;  %872 = vmatpush1.bf16.msra.mxu0 %v871_v62 }
  0xc5   :  { %v420_v1 = vsel %vm419_vm7, %v406_v63, %v408_v47  ;;  %v423_v4 = vsel %vm419_vm7, %v412_v55, %v1339_v0  ;;  %v451_v12 = vld [vmem:[#allocation2 + $0x58] sm:$0xff] }
  0xc6   :  { %432 = vst [vmem:[#allocation2 + $0x180] sm:$0x7] %v420_v1  ;;  %435 = vst [vmem:[#allocation2 + $0x198] sm:$0x7] %v423_v4 }
  0xc8   :  { %v154_v6 = vpop.permute.xlu1 %153  ;;  %v152_v7 = vpop.permute.xlu0 %151 }
  0xc9   :  { %v160_v8 = vsel %vm155_vm1, %v1294_v28, %v152_v7  ;;  %v161_v9 = vsel %vm155_vm1, %v152_v7, %v154_v6  ;;  %v489_v10 = vld [vmem:[#allocation2 + $0x188] sm:$0xff]  ;;  %v889_v28 = vpack.c.bf16 %v451_v12, %v445_v11  ;;  %v490_v22 = vld [vmem:[#allocation2 + $0x190] sm:$0xff] }
  0xca   :  { %172 = vst [vmem:[#allocation2 + $0x80] sm:$0x7] %v160_v8  ;;  %173 = vst [vmem:[#allocation2 + $0x88] sm:$0x7] %v161_v9  ;;  %529 = vmatprep.subr.mxu0 %v489_v10 }
  0xcc   :  { %v198_v13 = vpop.permute.xlu1 %197  ;;  %v196_v14 = vpop.permute.xlu0 %195 }
  0xcd   :  { %v204_v17 = vsel %vm199_vm2, %v1300_v37, %v196_v14  ;;  %v205_v18 = vsel %vm199_vm2, %v196_v14, %v198_v13  ;;  %v488_v19 = vld [vmem:[#allocation2 + $0x180] sm:$0xff]  ;;  %v491_v20 = vld [vmem:[#allocation2 + $0x198] sm:$0xff] }
  0xce   :  { %216 = vst [vmem:[#allocation2 + $0xb0] sm:$0x7] %v204_v17  ;;  %217 = vst [vmem:[#allocation2 + $0xb8] sm:$0x7] %v205_v18  ;;  %530 = vmatpush1.msra.mxu0 %v488_v19  ;;  %606 = vmatprep.subr.mxu1 %v491_v20 }
  0xcf   :  { %607 = vmatpush1.msra.mxu1 %v490_v22  ;;  %890 = vmatprep.subr.bf16.mxu0 %v889_v28 }
  0xd0   :  { %v242_v37 = vpop.permute.xlu1 %241  ;;  %v240_v24 = vpop.permute.xlu0 %239  ;;  %833 = vmatmul.mubr.msk.f32.vlgmr.msra.gmra.mrb[0].mxu0 %vm506_vm8, %v1353_v21  ;;  %905 = vmatprep.subr.bf16.mxu1 %v889_v28 }
  0xd1   :  { %v248_v26 = vsel %vm243_vm3, %v1308_v57, %v240_v24  ;;  %v249_v27 = vsel %vm243_vm3, %v240_v24, %v242_v37  ;;  %892 = vmatpush1.bf16.msra.mxu0 %v891_v23  ;;  %835 = vmatmul.mubr.msk.f32.vlgmr.msra.gmra.mrb[0].mxu1 %vm506_vm8, %v1353_v21  ;;  %v457_v31 = vld [vmem:[#allocation2 + $0x88] sm:$0xff]  ;;  %v456_v35 = vld [vmem:[#allocation2 + $0x80] sm:$0xff] }
  0xd2   :  { %260 = vst [vmem:[#allocation2 + $0xe0] sm:$0x7] %v248_v26  ;;  %261 = vst [vmem:[#allocation2 + $0xe8] sm:$0x7] %v249_v27  ;;  %910 = vmatpush1.bf16.msra.mxu1 %v891_v23  ;;  %583 = vmatprep.mubr.f32.mxu0 %v1002_v3 }
  0xd3   :  { %660 = vmatprep.mubr.f32.mxu1 %v1002_v3 }
  0xd4   :  { %v286_v30 = vpop.permute.xlu1 %285  ;;  %v284_v57 = vpop.permute.xlu0 %283  ;;  %834 = vmatmul.mubr.msk.f32.gmra.mrb[2].mxu0 %vm506_vm8, %v1365_v29 }
  0xd5   :  { %v292_v32 = vsel %vm287_vm4, %v1314_v5, %v284_v57  ;;  %v293_v33 = vsel %vm287_vm4, %v284_v57, %v286_v30  ;;  %v463_v34 = vld [vmem:[#allocation2 + $0xb8] sm:$0xff]  ;;  %v462_v38 = vld [vmem:[#allocation2 + $0xb0] sm:$0xff]  ;;  %836 = vmatmul.mubr.msk.f32.gmra.mrb[2].mxu1 %vm506_vm8, %v1365_v29  ;;  %731 = vmatprep.mubr.f32.mxu0 %v1002_v3 }
  0xd6   :  { %304 = vst [vmem:[#allocation2 + $0x110] sm:$0x7] %v292_v32  ;;  %305 = vst [vmem:[#allocation2 + $0x118] sm:$0x7] %v293_v33  ;;  %v893_v39 = vpack.c.bf16 %v463_v34, %v457_v31  ;;  %v895_v40 = vpack.c.bf16 %v462_v38, %v456_v35  ;;  %737 = vmatprep.mubr.f32.mxu1 %v1002_v3 }
  0xd8   :  { %v330_v41 = vpop.permute.xlu1 %329  ;;  %v328_v42 = vpop.permute.xlu0 %327  ;;  %894 = vmatprep.subr.bf16.mxu0 %v893_v39  ;;  %906 = vmatprep.subr.bf16.mxu1 %v893_v39 }
  0xd9   :  { %v336_v5 = vsel %vm331_vm5, %v1322_v25, %v328_v42  ;;  %v337_v43 = vsel %vm331_vm5, %v328_v42, %v330_v41  ;;  %896 = vmatpush1.bf16.msra.mxu0 %v895_v40  ;;  %911 = vmatpush1.bf16.msra.mxu1 %v895_v40  ;;  %v469_v46 = vld [vmem:[#allocation2 + $0xe8] sm:$0xff]  ;;  %v468_v49 = vld [vmem:[#allocation2 + $0xe0] sm:$0xff] }
  0xda   :  { %348 = vst [vmem:[#allocation2 + $0x140] sm:$0x7] %v336_v5  ;;  %349 = vst [vmem:[#allocation2 + $0x148] sm:$0x7] %v337_v43 }
  0xdc   :  { %v374_v44 = vpop.permute.xlu1 %373  ;;  %v372_v45 = vpop.permute.xlu0 %371 }
  0xdd   :  { %v380_v47 = vsel %vm375_vm6, %v1328_v36, %v372_v45  ;;  %v381_v3 = vsel %vm375_vm6, %v372_v45, %v374_v44  ;;  %v475_v48 = vld [vmem:[#allocation2 + $0x118] sm:$0xff]  ;;  %v474_v50 = vld [vmem:[#allocation2 + $0x110] sm:$0xff] }
  0xde   :  { %392 = vst [vmem:[#allocation2 + $0x170] sm:$0x7] %v380_v47  ;;  %393 = vst [vmem:[#allocation2 + $0x178] sm:$0x7] %v381_v3  ;;  %v897_v25 = vpack.c.bf16 %v475_v48, %v469_v46  ;;  %v899_v51 = vpack.c.bf16 %v474_v50, %v468_v49 }
  0xe0   :  { %v416_v52 = vpop.permute.xlu0 %415  ;;  %898 = vmatprep.subr.bf16.mxu0 %v897_v25  ;;  %907 = vmatprep.subr.bf16.mxu1 %v897_v25  ;;  %v418_v53 = vpop.permute.xlu1 %417 }
  0xe1   :  { %v424_v54 = vsel %vm419_vm7, %v1339_v0, %v416_v52  ;;  %900 = vmatpush1.bf16.msra.mxu0 %v899_v51  ;;  %912 = vmatpush1.bf16.msra.mxu1 %v899_v51  ;;  %v425_v36 = vsel %vm419_vm7, %v416_v52, %v418_v53  ;;  %v481_v2 = vld [vmem:[#allocation2 + $0x148] sm:$0xff]  ;;  %v480_v56 = vld [vmem:[#allocation2 + $0x140] sm:$0xff] }
  0xe2   :  { %436 = vst [vmem:[#allocation2 + $0x1a0] sm:$0x7] %v424_v54  ;;  %437 = vst [vmem:[#allocation2 + $0x1a8] sm:$0x7] %v425_v36 }
  0xe5   :  { %v487_v55 = vld [vmem:[#allocation2 + $0x178] sm:$0xff]  ;;  %v486_v58 = vld [vmem:[#allocation2 + $0x170] sm:$0xff] }
  0xe6   :  { %v901_v59 = vpack.c.bf16 %v487_v55, %v481_v2  ;;  %v903_v60 = vpack.c.bf16 %v486_v58, %v480_v56 }
  0xe8   :  { %902 = vmatprep.subr.bf16.mxu0 %v901_v59  ;;  %908 = vmatprep.subr.bf16.mxu1 %v901_v59 }
  0xe9   :  { %904 = vmatpush1.bf16.msra.mxu0 %v903_v60  ;;  %913 = vmatpush1.bf16.msra.mxu1 %v903_v60  ;;  %v493_v61 = vld [vmem:[#allocation2 + $0x1a8] sm:$0xff]  ;;  %v492_v62 = vld [vmem:[#allocation2 + $0x1a0] sm:$0xff] }
  0xea   :  { %683 = vmatprep.subr.mxu0 %v493_v61  ;;  %909 = vmatprep.subr.mxu1 %v493_v61 }
  0xed   :  { %684 = vmatpush1.msra.mxu0 %v492_v62  ;;  %914 = vmatpush1.msra.mxu1 %v492_v62 }
  0xee   :  { %837 = vmatmul.mubr.msk.f32.vlgmr.msra.gmra.mrb[4].mxu0 %vm506_vm8, %v1353_v21  ;;  %838 = vmatmul.mubr.msk.f32.vlgmr.msra.gmra.mrb[4].mxu1 %vm506_vm8, %v1365_v29 }
  0xf1   :  { %v1391_v63 = vpop.permute.xlu0 %498  ;;  %v1396_v10 = vpop.permute.xlu1 %503 }
 0x1a3   :  { %v579_v0 = vpop.f32.mrb[0].mxu0 }
 0x1a4   :  { %v656_v1 = vpop.f32.mrb[0].mxu1  ;;  %v580_v4 = vadd.f32 %v579_v0, %v1391_v63  ;;  %v581_v6 = vpop.f32.mrb[1].mxu0 }
 0x1a5   :  { %v657_v7 = vadd.f32 %v656_v1, %v1391_v63  ;;  %v582_v8 = vadd.f32 %v581_v6, %v1391_v63  ;;  %v658_v9 = vpop.f32.mrb[1].mxu1 }
 0x1a6   :  { %v839_v11 = vmul.f32 -1.442695, %v580_v4  ;;  %v659_v12 = vadd.f32 %v658_v9, %v1391_v63 }
 0x1a7   :  { %v841_v13 = vmul.f32 -1.442695, %v657_v7  ;;  %v840_v14 = vmul.f32 -1.442695, %v582_v8  ;;  %v585_v15 = vpop.f32.mrb[2].mxu0 }
 0x1a8   :  { %954 = vpow2.f32 %v839_v11  ;;  %v842_v16 = vmul.f32 -1.442695, %v659_v12  ;;  %v662_v17 = vpop.f32.mrb[2].mxu1  ;;  %v586_v18 = vadd.f32 %v585_v15, %v1396_v10  ;;  %v587_v19 = vpop.f32.mrb[3].mxu0 }
 0x1a9   :  { %956 = vpow2.f32 %v841_v13  ;;  %v663_v20 = vadd.f32 %v662_v17, %v1396_v10  ;;  %v588_v28 = vadd.f32 %v587_v19, %v1396_v10  ;;  %v664_v21 = vpop.f32.mrb[3].mxu1 }
 0x1aa   :  { %958 = vpow2.f32 %v840_v14  ;;  %v845_v22 = vmul.f32 -1.442695, %v586_v18  ;;  %v665_v23 = vadd.f32 %v664_v21, %v1396_v10 }
 0x1ab   :  { %960 = vpow2.f32 %v842_v16  ;;  %v847_v37 = vmul.f32 -1.442695, %v663_v20  ;;  %v846_v24 = vmul.f32 -1.442695, %v588_v28 }
 0x1ac   :  { %962 = vpow2.f32 %v845_v22  ;;  %v848_v26 = vmul.f32 -1.442695, %v665_v23 }
 0x1ad   :  { %964 = vpow2.f32 %v847_v37 }
 0x1ae   :  { %966 = vpow2.f32 %v846_v24 }
 0x1af   :  { %968 = vpow2.f32 %v848_v26 }
 0x1b2   :  { %v955_v27 = vpop.eup %954 }
 0x1b3   :  { %v957_v29 = vpop.eup %956  ;;  %v780_v30 = vadd.f32 1.0, %v955_v27 }
 0x1b4   :  { %v959_v57 = vpop.eup %958  ;;  %v782_v31 = vadd.f32 1.0, %v957_v29 }
 0x1b5   :  { %v961_v32 = vpop.eup %960  ;;  %970 = vrcp.f32 %v780_v30  ;;  %v781_v33 = vadd.f32 1.0, %v959_v57 }
 0x1b6   :  { %v963_v34 = vpop.eup %962  ;;  %972 = vrcp.f32 %v782_v31  ;;  %v783_v35 = vadd.f32 1.0, %v961_v32 }
 0x1b7   :  { %v965_v38 = vpop.eup %964  ;;  %974 = vrcp.f32 %v781_v33  ;;  %v786_v39 = vadd.f32 1.0, %v963_v34 }
 0x1b8   :  { %v967_v40 = vpop.eup %966  ;;  %976 = vrcp.f32 %v783_v35  ;;  %v788_v41 = vadd.f32 1.0, %v965_v38 }
 0x1b9   :  { %v969_v42 = vpop.eup %968  ;;  %978 = vrcp.f32 %v786_v39  ;;  %v787_v5 = vadd.f32 1.0, %v967_v40 }
 0x1ba   :  { %980 = vrcp.f32 %v788_v41  ;;  %v789_v43 = vadd.f32 1.0, %v969_v42 }
 0x1bb   :  { %982 = vrcp.f32 %v787_v5 }
 0x1bc   :  { %984 = vrcp.f32 %v789_v43 }
 0x1bf   :  { %v971_v44 = vpop.eup %970 }
 0x1c0   :  { %v973_v45 = vpop.eup %972  ;;  %816 = vst [vmem:[%s1446_s3] sm:$0xff] %v971_v44 }
 0x1c1   :  { %v975_v46 = vpop.eup %974  ;;  %818 = vst [vmem:[%s1446_s3 + $0x10] sm:$0xff] %v973_v45  ;;  %v733_v47 = vpop.f32.mrb[4].mxu0 }
 0x1c2   :  { %v739_v3 = vpop.f32.mrb[4].mxu1  ;;  %v977_v48 = vpop.eup %976  ;;  %817 = vst [vmem:[%s1446_s3 + $0x8] sm:$0xff] %v975_v46  ;;  %v734_v49 = vadd.f32 %v733_v47, %v1391_v63 }
 0x1c3   :  { %v740_v50 = vadd.f32 %v739_v3, %v1396_v10  ;;  %v735_v25 = vpop.f32.mrb[5].mxu0  ;;  %v741_v51 = vpop.f32.mrb[5].mxu1  ;;  %851 = vst [vmem:[%s1446_s3 + $0x30] sm:$0xff] %v977_v48 }
 0x1c4   :  { %v979_v52 = vpop.eup %978  ;;  %v736_v53 = vadd.f32 %v735_v25, %v1391_v63  ;;  %v742_v54 = vadd.f32 %v741_v51, %v1396_v10  ;;  %v843_v2 = vmul.f32 -1.442695, %v734_v49 }
 0x1c5   :  { %v981_v36 = vpop.eup %980  ;;  %819 = vst [vmem:[%s1446_s3 + $0x18] sm:$0xf] %v979_v52  ;;  %v849_v55 = vmul.f32 -1.442695, %v740_v50 }
 0x1c6   :  { %v983_v56 = vpop.eup %982  ;;  %821 = vst [vmem:[%s1446_s3 + $0x28] sm:$0xf] %v981_v36  ;;  %v844_v58 = vmul.f32 -1.442695, %v736_v53  ;;  %v850_v59 = vmul.f32 -1.442695, %v742_v54  ;;  %986 = vpow2.f32 %v843_v2 }
 0x1c7   :  { %v985_v60 = vpop.eup %984  ;;  %820 = vst [vmem:[%s1446_s3 + $0x20] sm:$0xf] %v983_v56  ;;  %988 = vpow2.f32 %v849_v55 }
 0x1c8   :  { %854 = vst [vmem:[%s1446_s3 + $0x48] sm:$0xf] %v985_v60  ;;  %990 = vpow2.f32 %v844_v58 }
 0x1c9   :  { %992 = vpow2.f32 %v850_v59 }
 0x1d0   :  { %v987_v61 = vpop.eup %986 }
 0x1d1   :  { %v989_v62 = vpop.eup %988  ;;  %v784_v63 = vadd.f32 1.0, %v987_v61 }
 0x1d2   :  { %v991_v0 = vpop.eup %990  ;;  %v790_v1 = vadd.f32 1.0, %v989_v62 }
 0x1d3   :  { %v993_v4 = vpop.eup %992  ;;  %994 = vrcp.f32 %v784_v63  ;;  %v785_v6 = vadd.f32 1.0, %v991_v0 }
 0x1d4   :  { %996 = vrcp.f32 %v790_v1  ;;  %v791_v7 = vadd.f32 1.0, %v993_v4 }
 0x1d5   :  { %998 = vrcp.f32 %v785_v6 }
 0x1d6   :  { %1000 = vrcp.f32 %v791_v7 }
 0x1dd   :  { %v995_v8 = vpop.eup %994 }
 0x1de   :  { %v997_v9 = vpop.eup %996  ;;  %852 = vst [vmem:[%s1446_s3 + $0x38] sm:$0xff] %v995_v8 }
 0x1df   :  { %v999_v10 = vpop.eup %998  ;;  %855 = vst [vmem:[%s1446_s3 + $0x50] sm:$0xf] %v997_v9 }
 0x1e0   :  { %v1001_v11 = vpop.eup %1000  ;;  %853 = vst [vmem:[%s1446_s3 + $0x40] sm:$0xff] %v999_v10 }
 0x1e1   :  { %856 = vst [vmem:[%s1446_s3 + $0x58] sm:$0xf] %v1001_v11 }

</bundles_post_ra>
